<compile_context>
chip_gen: v7x
topology: tpu7x:2x2x1
jax: 0.10.0
libtpu: 0.0.40
codegen_flags: <defaults>
</compile_context>

<pallas_src>
import functools

import jax
import jax.numpy as jnp
from jax.experimental import pallas as pl
from jax.experimental.pallas import tpu as pltpu


def _lsr_kernel(tgt_ref, x_ref, out_ref, *, e: float, n_rows: int, tb: int):
    # tgt_ref: (TB, 1) int32, x_ref: (TB, C) native dtype, out_ref: (1, 1, 1) f32
    pid = pl.program_id(0)

    x = x_ref[...].astype(jnp.float32)            # cast AFTER the VMEM load
    TB, C = x.shape                               # C == full class dim (untiled)

    # Numerically stable pieces without materializing `shifted = x - m`:
    m = jnp.max(x, axis=1, keepdims=True)                             # (TB, 1)
    lse = jnp.log(jnp.sum(jnp.exp(x - m), axis=1, keepdims=True))     # (TB, 1)

    # Label column + plain row sum in the same traversal of the tile.
    labels = tgt_ref[...]                                             # (TB, 1)
    col = jax.lax.broadcasted_iota(jnp.int32, (TB, C), 1)
    x_label = jnp.sum(jnp.where(col == labels, x, 0.0),
                      axis=1, keepdims=True)                          # (TB, 1)
    row_sum = jnp.sum(x, axis=1, keepdims=True)                       # (TB, 1)

    # loss_row = sum_c -logp_c * (one_hot_c*(1-e) + e/(C-1))
    #          = (1-e)*(lse - shifted[label]) + (e/(C-1))*(C*lse - sum(shifted))
    # with shifted[label] = x_label - m and sum(shifted) = row_sum - C*m.
    # (PyTorch module adds e/(C-1) to the label column too — preserved.)
    smooth = e / (C - 1)
    row_loss = ((1.0 - e) * (lse - (x_label - m))
                + smooth * (C * lse - (row_sum - C * m)))              # (TB, 1)

    # Drop rows of a padded final tile via SELECT (garbage is discarded).
    row_idx = pid * tb + jax.lax.broadcasted_iota(jnp.int32, (TB, 1), 0)
    row_loss = jnp.where(row_idx < n_rows, row_loss, 0.0)

    # Per-tile partial sum; mean over the true batch happens in the wrapper.
    out_ref[...] = jnp.sum(row_loss, axis=0, keepdims=True).reshape(1, 1, 1)


def lsr_loss(x: jax.Array, target: jax.Array, e: float = 0.1,
             block_rows: int | None = None) -> jax.Array:
    """Pallas implementation of LSR(e, reduction='mean').forward(x, target)."""
    if x.ndim != 2:
        raise ValueError("Only 2 dimension tensors are implemented")
    B, C = x.shape
    if target.shape[0] != B:
        raise ValueError("Expected input batchsize to match target batch_size")
    if C < 2:
        raise ValueError("LSR needs at least 2 classes (e / (C - 1) undefined)")

    tgt2d = target.astype(jnp.int32).reshape(B, 1)

    itemsize = x.dtype.itemsize
    # dtype-native sublane multiple: 8 for f32, 16 for bf16, 32 for int8/fp8
    sublane = 8 * max(1, 4 // max(1, itemsize))

    # Generation-aware VMEM budget (v5e/v6e: 128 MiB, v7x: 64 MiB per TC).
    try:
        vmem_cap = int(pltpu.get_tpu_info().vmem_capacity_bytes)
    except Exception:
        vmem_cap = 64 * 1024 * 1024           # conservative (v7x per-core)
    vmem_limit = min((3 * vmem_cap) // 4, 96 * 1024 * 1024)

    if block_rows is None:
        # Per-row working set: double-buffered native logits, ~4 full-width
        # f32/i32 temps (cast, exp input, iota, where), plus lane-padded
        # (TB,1) narrow temps and the double-buffered (TB,1) label tile.
        per_row = C * (2 * itemsize + 16) + 4096
        budget = vmem_limit // 2
        tb = (budget // per_row) // sublane * sublane
        tb = max(sublane, min(tb, 8192))
    else:
        tb = int(block_rows)
    if tb >= B:
        tb = B                                # single full-array tile
    n_tiles = pl.cdiv(B, tb)

    kernel = functools.partial(_lsr_kernel, e=float(e), n_rows=B, tb=tb)

    partials = pl.pallas_call(
        kernel,
        out_shape=jax.ShapeDtypeStruct((n_tiles, 1, 1), jnp.float32),
        grid=(n_tiles,),
        in_specs=[
            pl.BlockSpec((tb, 1), lambda i: (i, 0)),   # labels tile (int32)
            pl.BlockSpec((tb, C), lambda i: (i, 0)),   # logits tile, native dtype
        ],
        # One independent partial-sum block per grid step -> "parallel" axis
        # (uses both TensorCores on v7x; neutral on v5e/v6e).
        out_specs=pl.BlockSpec((1, 1, 1), lambda i: (i, 0, 0)),
        compiler_params=pltpu.CompilerParams(
            dimension_semantics=("parallel",),
            vmem_limit_bytes=int(vmem_limit),
        ),
    )(tgt2d, x)

    return jnp.sum(partials) / B              # 'mean' over the true batch


def _lsr_reference(x, target, e=0.1):
    """Pure-JAX reference mirroring the PyTorch module."""
    B, C = x.shape
    one_hot = jax.nn.one_hot(target, C, dtype=jnp.float32) * (1.0 - e)
    smoothed = one_hot + e / (C - 1)
    logp = jax.nn.log_softmax(x.astype(jnp.float32), axis=1)
    loss = jnp.sum(-logp * smoothed, axis=1)
    return jnp.mean(loss)


if __name__ == "__main__":
    key = jax.random.PRNGKey(0)
    kx, kt, kx2, kt2 = jax.random.split(key, 4)

    # Small 2-D logits, as the module requires: batch=8, classes=32 (auto tb).
    B, C = 8, 32
    x = jax.random.normal(kx, (B, C), dtype=jnp.float32)
    target = jax.random.randint(kt, (B,), 0, C, dtype=jnp.int32)
    loss = lsr_loss(x, target, e=0.1)
    jax.block_until_ready(loss)
    ref = _lsr_reference(x, target, e=0.1)
    assert jnp.allclose(loss, ref, atol=1e-5, rtol=1e-5), (loss, ref)

    # Multi-tile parallel grid with a padded final tile (B=20, TB=8 -> 3 tiles).
    B2, C2 = 20, 160
    x2 = jax.random.normal(kx2, (B2, C2), dtype=jnp.float32)
    t2 = jax.random.randint(kt2, (B2,), 0, C2, dtype=jnp.int32)
    loss2 = lsr_loss(x2, t2, e=0.1, block_rows=8)
    jax.block_until_ready(loss2)
    ref2 = _lsr_reference(x2, t2, e=0.1)
    assert jnp.allclose(loss2, ref2, atol=1e-5, rtol=1e-5), (loss2, ref2)

    # bf16 logits stay bf16 in HBM (f32 cast inside the kernel); tb rounded to
    # the bf16 sublane multiple (16) -> 2 tiles, last one padded.
    xb = x2.astype(jnp.bfloat16)
    loss3 = lsr_loss(xb, t2, e=0.1, block_rows=16)
    jax.block_until_ready(loss3)
    ref3 = _lsr_reference(xb.astype(jnp.float32), t2, e=0.1)
    assert jnp.allclose(loss3, ref3, atol=2e-2, rtol=2e-2), (loss3, ref3)

    print("KERNEL_OK")
</pallas_src>

<mosaic_0001>
module attributes {stable_mosaic.version = 11 : i64} {
  func.func @_lsr_kernel(%arg0: i32, %arg1: memref<8x1xi32, #tpu.memory_space<vmem>>, %arg2: memref<8x32xf32, #tpu.memory_space<vmem>>, %arg3: memref<1x1x1xf32, #tpu.memory_space<vmem>>) attributes {dimension_semantics = [#tpu.dimension_semantics<parallel>], iteration_bounds = array<i64: 1>, scalar_prefetch = 0 : i64, scratch_operands = 0 : i64, tpu.core_type = #tpu.core_type<tc>, window_params = [{transform_indices = @transform_0, window_bounds = array<i64: 8, 1>}, {transform_indices = @transform_1, window_bounds = array<i64: 8, 32>}, {transform_indices = @transform_2, window_bounds = array<i64: 1, 1, 1>}]} {
    %c0 = arith.constant 0 : index
    %c0_0 = arith.constant 0 : index
    %0 = vector.load %arg2[%c0, %c0_0] : memref<8x32xf32, #tpu.memory_space<vmem>>, vector<8x32xf32>
    %cst = arith.constant dense<0xFF800000> : vector<8xf32>
    %1 = vector.multi_reduction <maximumf>, %0, %cst [1] : vector<8x32xf32> to vector<8xf32>
    %2 = vector.shape_cast %1 : vector<8xf32> to vector<8x1xf32>
    %3 = vector.broadcast %2 : vector<8x1xf32> to vector<8x32xf32>
    %4 = arith.subf %0, %3 : vector<8x32xf32>
    %5 = math.exp %4 : vector<8x32xf32>
    %cst_1 = arith.constant dense<0.000000e+00> : vector<8xf32>
    %6 = vector.multi_reduction <add>, %5, %cst_1 [1] : vector<8x32xf32> to vector<8xf32>
    %7 = vector.shape_cast %6 : vector<8xf32> to vector<8x1xf32>
    %8 = math.log %7 : vector<8x1xf32>
    %c0_2 = arith.constant 0 : index
    %c0_3 = arith.constant 0 : index
    %9 = vector.load %arg1[%c0_2, %c0_3] : memref<8x1xi32, #tpu.memory_space<vmem>>, vector<8x1xi32>
    %10 = tpu.iota {dimensions = array<i32: 1>} : vector<8x32xi32>
    %11 = vector.broadcast %9 : vector<8x1xi32> to vector<8x32xi32>
    %12 = arith.cmpi eq, %10, %11 : vector<8x32xi32>
    %cst_4 = arith.constant 0.000000e+00 : f32
    %13 = vector.broadcast %cst_4 : f32 to vector<8x32xf32>
    %14 = arith.select %12, %0, %13 : vector<8x32xi1>, vector<8x32xf32>
    %cst_5 = arith.constant dense<0.000000e+00> : vector<8xf32>
    %15 = vector.multi_reduction <add>, %14, %cst_5 [1] : vector<8x32xf32> to vector<8xf32>
    %16 = vector.shape_cast %15 : vector<8xf32> to vector<8x1xf32>
    %cst_6 = arith.constant dense<0.000000e+00> : vector<8xf32>
    %17 = vector.multi_reduction <add>, %0, %cst_6 [1] : vector<8x32xf32> to vector<8xf32>
    %18 = vector.shape_cast %17 : vector<8xf32> to vector<8x1xf32>
    %19 = arith.subf %16, %2 : vector<8x1xf32>
    %20 = arith.subf %8, %19 : vector<8x1xf32>
    %cst_7 = arith.constant 0.899999976 : f32
    %21 = vector.broadcast %cst_7 : f32 to vector<8x1xf32>
    %22 = arith.mulf %21, %20 : vector<8x1xf32>
    %cst_8 = arith.constant 3.200000e+01 : f32
    %23 = vector.broadcast %cst_8 : f32 to vector<8x1xf32>
    %24 = arith.mulf %23, %8 : vector<8x1xf32>
    %cst_9 = arith.constant 3.200000e+01 : f32
    %25 = vector.broadcast %cst_9 : f32 to vector<8x1xf32>
    %26 = arith.mulf %25, %2 : vector<8x1xf32>
    %27 = arith.subf %18, %26 : vector<8x1xf32>
    %28 = arith.subf %24, %27 : vector<8x1xf32>
    %cst_10 = arith.constant 0.0032258064 : f32
    %29 = vector.broadcast %cst_10 : f32 to vector<8x1xf32>
    %30 = arith.mulf %29, %28 : vector<8x1xf32>
    %31 = arith.addf %22, %30 : vector<8x1xf32>
    %c8_i32 = arith.constant 8 : i32
    %32 = arith.muli %arg0, %c8_i32 : i32
    %33 = tpu.iota {dimensions = array<i32: 0>} : vector<8x1xi32>
    %34 = vector.broadcast %32 : i32 to vector<8x1xi32>
    %35 = arith.addi %34, %33 : vector<8x1xi32>
    %c8_i32_11 = arith.constant 8 : i32
    %36 = vector.broadcast %c8_i32_11 : i32 to vector<8x1xi32>
    %37 = arith.cmpi slt, %35, %36 : vector<8x1xi32>
    %cst_12 = arith.constant 0.000000e+00 : f32
    %38 = vector.broadcast %cst_12 : f32 to vector<8x1xf32>
    %39 = arith.select %37, %31, %38 : vector<8x1xi1>, vector<8x1xf32>
    %cst_13 = arith.constant dense<0.000000e+00> : vector<1xf32>
    %40 = vector.multi_reduction <add>, %39, %cst_13 [0] : vector<8x1xf32> to vector<1xf32>
    %41 = vector.shape_cast %40 : vector<1xf32> to vector<1x1xf32>
    %42 = vector.shape_cast %41 : vector<1x1xf32> to vector<1x1x1xf32>
    %c0_14 = arith.constant 0 : index
    %c0_15 = arith.constant 0 : index
    %c0_16 = arith.constant 0 : index
    %43 = vector.load %arg3[%c0_14, %c0_15, %c0_16] : memref<1x1x1xf32, #tpu.memory_space<vmem>>, vector<1x1x1xf32>
    tpu.vector_store %arg3[%c0_14, %c0_15, %c0_16], %42 {strides = array<i32>} : memref<1x1x1xf32, #tpu.memory_space<vmem>>, vector<1x1x1xf32>,
    return
  }
  func.func @transform_0(%arg0: i32) -> (i32, i32) {
    %c0_i32 = arith.constant 0 : i32
    %c0_i32_0 = arith.constant 0 : i32
    return %arg0, %c0_i32 : i32, i32
  }
  func.func @transform_1(%arg0: i32) -> (i32, i32) {
    %c0_i32 = arith.constant 0 : i32
    %c0_i32_0 = arith.constant 0 : i32
    return %arg0, %c0_i32 : i32, i32
  }
  func.func @transform_2(%arg0: i32) -> (i32, i32, i32) {
    %c0_i32 = arith.constant 0 : i32
    %c0_i32_0 = arith.constant 0 : i32
    %c0_i32_1 = arith.constant 0 : i32
    return %arg0, %c0_i32, %c0_i32_0 : i32, i32, i32
  }
}

</mosaic_0001>

<bundles_post_ra>
// kernel: tpu_custom_call.1
= control target key start
LH: loop header
LB: loop body
LE: loop exit
PB: predicated region body
PF: predicated region fallthrough
CT: control target
= control target key end

     0   :  { %vm13_vm0 = vcmask 261120   ;;  %s147_s0 = inlined_call_operand.vmem [shape: s32[8,1], index: 0, kind: input, shape index: {}]   ;;  %s148_s1 = inlined_call_operand.vmem [shape: f32[8,32], index: 1, kind: input, shape index: {}]   ;;  %s149_s2 = inlined_call_operand.hbm [shape: f32[1,1,1], index: 2, kind: output, shape index: {}]  }
   0x1   :  { %v12_v0 = vld [vmem:[%s148_s1] sm:$0xff] }
   0x2   :  { %7 = vsyncpa [#allocation3], 0  ;;  %v14_v1 = vsel %vm13_vm0, %v12_v0, -inf  ;;  %v108_v2 = vmov 0   ;;  %v25_v3 = vld [vmem:[%s147_s0] sm:$0xff]  ;;  %v26_v7 = vlaneseq  ;;  %v36_v14 = vsel %vm13_vm0, %v12_v0, 0.0 }
   0x3   :  { %79 = vset.pattern.permute.xlu0 %v108_v2  ;;  %s109_s0 = smov [#allocation2]   ;;  %vm61_vm2 = vcmask 0  }
   0x4   :  { %15 = vmax.xlane.f32.xlu0 %v14_v1  ;;  %v27_v8 = vand.u32 127, %v26_v7  ;;  %s69_s1 = sshll.u32 %s109_s0, 4  ;;  %s70_s1 = int_to_ptr.vmem [resolvable:$true] %s69_s1 }
   0x5   :  { %s84_s13 = scalar_lea.vmem %s70_s1, 16  ;;  %s88_s14 = scalar_lea.vmem %s70_s1, 32 }
   0x6   :  { %p85_p0 = scmp.ne.s32.totalorder %s70_s1, %s84_s13  ;;  %p89_p1 = scmp.lt.s32.totalorder %s70_s1, %s70_s1 }
   0x7   :  { %p90_p2 = scmp.lt.s32.totalorder %s88_s14, %s84_s13 }
   0x9   :  { %p91_p3 = por %p90_p2, %p89_p1 }
   0xb   :  { %p92_p4 = pnand %p91_p3, %p85_p0 }
  0x1a   :  { %29 = vperm.xlu0 %79, %v25_v3  }
  0x91   :  { %v16_v4 = vpop.xlane.xlu0 %15 }
  0x92   :  { %v17_v5 = vsub.f32 %v12_v0, %v16_v4  ;;  %v43_v21 = vmul.f32 32.0, %v16_v4 }
  0x94   :  { %v18_v6 = vmul.f32 1.442695, %v17_v5 }
  0x96   :  { %80 = vpow2.f32 %v18_v6 }
  0x99   :  { %v30_v9 = vpop.permute.xlu0 %29 }
  0x9a   :  { %vm31_vm1 = vcmp.eq.s32.totalorder %v27_v8, %v30_v9 }
  0x9b   :  { %v32_v11 = vsel %vm31_vm1, %v12_v0, 0.0 }
  0x9c   :  { %v33_v13 = vsel %vm13_vm0, %v32_v11, 0.0 }
  0xa0   :  { %v81_v10 = vpop.eup %80 }
  0xa1   :  { %v20_v12 = vsel %vm13_vm0, %v81_v10, 0.0 }
  0xa2   :  { %21 = vadd.xlane.f32.xlu1 %v20_v12 }
  0xa6   :  { %34 = vadd.xlane.f32.xlu1 %v33_v13 }
  0xaa   :  { %37 = vadd.xlane.f32.xlu1 %v36_v14 }
 0x12f   :  { %v22_v15 = vpop.xlane.xlu1 %21 }
 0x130   :  { %82 = vlog2.f32 %v22_v15 }
 0x133   :  { %v35_v16 = vpop.xlane.xlu1 %34 }
 0x134   :  { %v39_v20 = vsub.f32 %v35_v16, %v16_v4 }
 0x137   :  { %v38_v18 = vpop.xlane.xlu1 %37 }
 0x138   :  { %v44_v24 = vsub.f32 %v38_v18, %v43_v21 }
 0x13a   :  { %v83_v17 = vpop.eup %82 }
 0x13b   :  { %v24_v19 = vmul.f32 0.6931472, %v83_v17 }
 0x13d   :  { %v40_v22 = vsub.f32 %v24_v19, %v39_v20  ;;  %v42_v23 = vmul.f32 32.0, %v24_v19 }
 0x13f   :  { %v45_v25 = vsub.f32 %v42_v23, %v44_v24  ;;  %v41_v26 = vmul.f32 0.9, %v40_v22 }
 0x141   :  { %v46_v27 = vmul.f32 0.0032258064, %v45_v25 }
 0x143   :  { %v47_v28 = vadd.f32 %v46_v27, %v41_v26 }
 0x145   :  { %v55_v29 = vrot.slane %v47_v28, 4 }
 0x147   :  { %v56_v30 = vadd.f32 %v55_v29, %v47_v28 }
 0x149   :  { %v57_v31 = vrot.slane %v56_v30, 2 }
 0x14b   :  { %v58_v32 = vadd.f32 %v57_v31, %v56_v30 }
 0x14d   :  { %v59_v33 = vrot.slane %v58_v32, 1 }
 0x14f   :  { %v60_v34 = vadd.f32 %v59_v33, %v58_v32 }
 0x151   :  { %62 = vst.msk [vmem:[#allocation2] sm:$0x1] %vm61_vm2, %v60_v34 }
 0x152   :  { %95 = shalt.err (!%p92_p4)
}
 0x153   :  { %s96_s17 = scalar_lea.hbm %s149_s2, 16 }
 0x154   :  { %p97_p5 = scmp.ne.s32.totalorder %s149_s2, %s96_s17  ;;  %p100_p6 = scmp.lt.u32.totalorder %s96_s17, %s149_s2 }
 0x156   :  { %p102_p7 = pnand %p100_p6, %p97_p5 }
 0x158   :  { %105 = shalt.err (!%p102_p7)
}
 0x159   :  { %72 = dma.vmem_to_hbm [thread:$0]  %s70_s1, 16, %s149_s2, [#allocation3]  }
 0x15a   :  { %106 = dma.done.wait [#allocation3], 16  }
 0x15b   :  { %107 = vsyncadd [#allocation3], 4294967280 }
 0x15c   :  { %76 = vsyncpa [#allocation3], 1 }

</bundles_post_ra>
